<compile_context>
chip_gen: v5e
topology: v5e:2x2
jax: 0.10.0
libtpu: 0.0.40
codegen_flags: <defaults>
</compile_context>

<pallas_src>
import functools

import jax
import jax.numpy as jnp
from jax.experimental import pallas as pl
from jax.experimental.pallas import tpu as pltpu


def _round_up(x, m):
    return ((x + m - 1) // m) * m


def _round_down(x, m):
    return (x // m) * m


def _qdwi_kernel(apinv_ref, s_ref, bvec_ref,
                 recon_ref, adc_ref, ax_ref, logb_ref, *, nb, eps):
    # apinv_ref: (2*nb,) f32 in SMEM   -- row-major flattened pinv(A)
    # s_ref:     (nb, TN) f32 in VMEM  -- current pixel tile of the signal
    # bvec_ref:  (nb, 1)  f32 in VMEM  -- b-values column (replicated)
    s = s_ref[...]
    s = jnp.where(s <= 0.0, eps, s)                 # S[S<=0] = eps
    logb = jnp.log(s)                               # b = log(S)
    logb_ref[...] = logb

    # x = pinv(A) @ b  done as nb scalar-broadcast FMAs per output row (VPU).
    # apinv_flat[k] = pinv[0,k], apinv_flat[nb+k] = pinv[1,k].
    x0 = apinv_ref[0] * logb[0:1, :]                # (1, TN)
    x1 = apinv_ref[nb] * logb[0:1, :]               # (1, TN)
    for k in range(1, nb):                          # nb static -> unrolled
        row = logb[k:k + 1, :]
        x0 = x0 + apinv_ref[k] * row
        x1 = x1 + apinv_ref[nb + k] * row

    adc_ref[...] = x1                               # ADC = x[1]

    # Ax = A @ x = x0 - b[:,None] * x1   (A = [1, -b])
    # model_recon = s0 * exp(-b*ADC) = exp(x0 - b*ADC) = exp(Ax)
    ax = x0 - bvec_ref[...] * x1                    # (nb, TN) broadcast
    ax_ref[...] = ax
    recon_ref[...] = jnp.exp(ax)


def qdwi_subnet_forward(img, b_vector, inshape, eps=1e-4, tile_n=32768):
    """img: (nb, nx, ny, nz) float32; b_vector: (nb,) float32."""
    nb = b_vector.shape[0]
    nx, ny, nz = inshape
    n_pix = nx * ny * nz
    assert img.shape == (nb, nx, ny, nz)

    # --- tile / padding choice -------------------------------------------
    n128 = _round_up(n_pix, 128)
    # Per-pixel-column bytes, double-buffered: in (nb) + out (3*nb + 1), f32.
    bytes_per_col = 2 * 4 * (4 * nb + 1)
    vmem_cap = max(128, _round_down((12 << 20) // bytes_per_col, 128))
    tile = max(128, _round_down(min(int(tile_n), n128, vmem_cap), 128))
    # Keep >=2 grid steps when possible so v7x's two TensorCores both get work.
    if tile >= n128 and n128 >= 256:
        tile = _round_up(n128 // 2, 128)
    n_padded = _round_up(n_pix, tile)
    grid = (n_padded // tile,)

    # --- host-side prep of the tiny constants ----------------------------
    b_vector = b_vector.astype(jnp.float32)
    s = img.reshape(nb, n_pix).astype(jnp.float32)
    if n_padded != n_pix:
        # zero-pad; padded pixels hit the eps clamp and stay finite.
        s = jnp.pad(s, ((0, 0), (0, n_padded - n_pix)))

    A = jnp.stack([jnp.ones_like(b_vector), -b_vector], axis=1)   # (nb, 2)
    A_pinv = jnp.linalg.pinv(A).astype(jnp.float32)               # (2, nb)
    apinv_flat = A_pinv.reshape(-1)                               # (2*nb,)
    bvec_col = b_vector.reshape(nb, 1)                            # (nb, 1)

    out_shapes = (
        jax.ShapeDtypeStruct((nb, n_padded), jnp.float32),  # model_recon
        jax.ShapeDtypeStruct((1, n_padded), jnp.float32),   # ADC
        jax.ShapeDtypeStruct((nb, n_padded), jnp.float32),  # Ax
        jax.ShapeDtypeStruct((nb, n_padded), jnp.float32),  # b = log(S)
    )

    in_specs = [
        pl.BlockSpec(memory_space=pltpu.MemorySpace.SMEM),   # pinv(A) flat
        pl.BlockSpec((nb, tile), lambda i: (0, i)),          # S tile
        pl.BlockSpec((nb, 1), lambda i: (0, 0)),             # b_vector column
    ]
    out_specs = (
        pl.BlockSpec((nb, tile), lambda i: (0, i)),
        pl.BlockSpec((1, tile), lambda i: (0, i)),
        pl.BlockSpec((nb, tile), lambda i: (0, i)),
        pl.BlockSpec((nb, tile), lambda i: (0, i)),
    )

    cost = pl.CostEstimate(
        flops=8 * nb * n_padded,
        transcendentals=2 * nb * n_padded,           # log + exp per element
        bytes_accessed=4 * n_padded * (4 * nb + 1),  # in (nb) + out (3nb+1)
    )

    recon, adc, ax, logb = pl.pallas_call(
        functools.partial(_qdwi_kernel, nb=nb, eps=float(eps)),
        out_shape=out_shapes,
        grid_spec=pltpu.PrefetchScalarGridSpec(
            num_scalar_prefetch=0,
            grid=grid,
            in_specs=in_specs,
            out_specs=out_specs,
        ),
        compiler_params=pltpu.CompilerParams(
            dimension_semantics=("parallel",)),
        cost_estimate=cost,
    )(apinv_flat, s, bvec_col)

    # Slice off lane padding and reshape back to volume layout.
    model_recon = recon[:, :n_pix].reshape(nb, nx, ny, nz)
    ADC = adc[0, :n_pix].reshape(nx, ny, nz)
    Ax = ax[:, :n_pix].reshape(nb, nx, ny, nz)
    b_out = logb[:, :n_pix].reshape(nb, nx, ny, nz)
    return model_recon, ADC, Ax, b_out


def _reference(img, b_vector, inshape, eps=1e-4):
    """Pure-JAX reference mirroring the PyTorch module."""
    nb = b_vector.shape[0]
    nx, ny, nz = inshape
    s = img.reshape(nb, nx * ny * nz)
    A = jnp.stack([jnp.ones_like(b_vector), -b_vector], axis=1)
    s = jnp.where(s <= 0.0, eps, s)
    b = jnp.log(s)
    x = jnp.linalg.pinv(A) @ b
    s0 = jnp.exp(x[0])
    ADC = x[1]
    Ax = A @ x
    model_recon = s0 * jnp.exp(-b_vector[:, None] * ADC)
    return (model_recon.reshape(nb, nx, ny, nz),
            ADC.reshape(nx, ny, nz),
            Ax.reshape(nb, nx, ny, nz),
            b.reshape(nb, nx, ny, nz))


if __name__ == "__main__":
    # Small deterministic problem: nb=8 b-values, volume 4x8x16 (N=512 pixels).
    nb = 8
    inshape = (4, 8, 16)
    key = jax.random.PRNGKey(0)
    (k_img,) = jax.random.split(key, 1)

    # b-values scaled to keep exp() well-conditioned.
    b_vector = jnp.linspace(0.0, 1.0, nb, dtype=jnp.float32)  # (nb,)

    # Positive-ish signal with a few non-positive entries to hit the eps clamp.
    img = jax.random.uniform(k_img, (nb,) + inshape, jnp.float32,
                             minval=-0.05, maxval=1.0)

    outs = qdwi_subnet_forward(img, b_vector, inshape, eps=1e-4)
    outs = jax.block_until_ready(outs)

    refs = _reference(img, b_vector, inshape, eps=1e-4)
    for o, r in zip(outs, refs):
        assert o.shape == r.shape and o.dtype == r.dtype
        assert jnp.max(jnp.abs(o - r)) < 1e-3, jnp.max(jnp.abs(o - r))

    print("KERNEL_OK")
</pallas_src>

<mosaic_0001>
module attributes {stable_mosaic.version = 11 : i64} {
  func.func @_qdwi_kernel(%arg0: i32, %arg1: memref<16xf32, #tpu.memory_space<smem>>, %arg2: memref<8x256xf32, #tpu.memory_space<vmem>>, %arg3: memref<8x1xf32, #tpu.memory_space<vmem>>, %arg4: memref<8x256xf32, #tpu.memory_space<vmem>>, %arg5: memref<1x256xf32, #tpu.memory_space<vmem>>, %arg6: memref<8x256xf32, #tpu.memory_space<vmem>>, %arg7: memref<8x256xf32, #tpu.memory_space<vmem>>) attributes {dimension_semantics = [#tpu.dimension_semantics<parallel>], iteration_bounds = array<i64: 2>, scalar_prefetch = 0 : i64, scratch_operands = 0 : i64, tpu.core_type = #tpu.core_type<tc>, window_params = [{transform_indices = @transform_0, window_bounds = array<i64: 16>}, {transform_indices = @transform_1, window_bounds = array<i64: 8, 256>}, {pipeline_mode = #tpu.pipeline_mode<synchronous>, transform_indices = @transform_2, window_bounds = array<i64: 8, 1>}, {transform_indices = @transform_3, window_bounds = array<i64: 8, 256>}, {transform_indices = @transform_4, window_bounds = array<i64: 1, 256>}, {transform_indices = @transform_5, window_bounds = array<i64: 8, 256>}, {transform_indices = @transform_6, window_bounds = array<i64: 8, 256>}]} {
    %c0 = arith.constant 0 : index
    %c0_0 = arith.constant 0 : index
    %0 = vector.load %arg2[%c0, %c0_0] : memref<8x256xf32, #tpu.memory_space<vmem>>, vector<8x256xf32>
    %cst = arith.constant 0.000000e+00 : f32
    %1 = vector.broadcast %cst : f32 to vector<8x256xf32>
    %2 = arith.cmpf ole, %0, %1 : vector<8x256xf32>
    %cst_1 = arith.constant 9.99999974E-5 : f32
    %3 = vector.broadcast %cst_1 : f32 to vector<8x256xf32>
    %4 = arith.select %2, %3, %0 : vector<8x256xi1>, vector<8x256xf32>
    %5 = math.log %4 : vector<8x256xf32>
    %c0_2 = arith.constant 0 : index
    %c0_3 = arith.constant 0 : index
    %6 = vector.load %arg7[%c0_2, %c0_3] : memref<8x256xf32, #tpu.memory_space<vmem>>, vector<8x256xf32>
    tpu.vector_store %arg7[%c0_2, %c0_3], %5 {strides = array<i32>} : memref<8x256xf32, #tpu.memory_space<vmem>>, vector<8x256xf32>,
    %c0_4 = arith.constant 0 : index
    %7 = memref.load %arg1[%c0_4] : memref<16xf32, #tpu.memory_space<smem>>
    %8 = vector.extract_strided_slice %5 {offsets = [0, 0], sizes = [1, 256], strides = [1, 1]} : vector<8x256xf32> to vector<1x256xf32>
    %9 = vector.broadcast %7 : f32 to vector<1x256xf32>
    %10 = arith.mulf %9, %8 : vector<1x256xf32>
    %c8 = arith.constant 8 : index
    %11 = memref.load %arg1[%c8] : memref<16xf32, #tpu.memory_space<smem>>
    %12 = vector.extract_strided_slice %5 {offsets = [0, 0], sizes = [1, 256], strides = [1, 1]} : vector<8x256xf32> to vector<1x256xf32>
    %13 = vector.broadcast %11 : f32 to vector<1x256xf32>
    %14 = arith.mulf %13, %12 : vector<1x256xf32>
    %15 = vector.extract_strided_slice %5 {offsets = [1, 0], sizes = [1, 256], strides = [1, 1]} : vector<8x256xf32> to vector<1x256xf32>
    %c1 = arith.constant 1 : index
    %16 = memref.load %arg1[%c1] : memref<16xf32, #tpu.memory_space<smem>>
    %17 = vector.broadcast %16 : f32 to vector<1x256xf32>
    %18 = arith.mulf %17, %15 : vector<1x256xf32>
    %19 = arith.addf %10, %18 : vector<1x256xf32>
    %c9 = arith.constant 9 : index
    %20 = memref.load %arg1[%c9] : memref<16xf32, #tpu.memory_space<smem>>
    %21 = vector.broadcast %20 : f32 to vector<1x256xf32>
    %22 = arith.mulf %21, %15 : vector<1x256xf32>
    %23 = arith.addf %14, %22 : vector<1x256xf32>
    %24 = vector.extract_strided_slice %5 {offsets = [2, 0], sizes = [1, 256], strides = [1, 1]} : vector<8x256xf32> to vector<1x256xf32>
    %c2 = arith.constant 2 : index
    %25 = memref.load %arg1[%c2] : memref<16xf32, #tpu.memory_space<smem>>
    %26 = vector.broadcast %25 : f32 to vector<1x256xf32>
    %27 = arith.mulf %26, %24 : vector<1x256xf32>
    %28 = arith.addf %19, %27 : vector<1x256xf32>
    %c10 = arith.constant 10 : index
    %29 = memref.load %arg1[%c10] : memref<16xf32, #tpu.memory_space<smem>>
    %30 = vector.broadcast %29 : f32 to vector<1x256xf32>
    %31 = arith.mulf %30, %24 : vector<1x256xf32>
    %32 = arith.addf %23, %31 : vector<1x256xf32>
    %33 = vector.extract_strided_slice %5 {offsets = [3, 0], sizes = [1, 256], strides = [1, 1]} : vector<8x256xf32> to vector<1x256xf32>
    %c3 = arith.constant 3 : index
    %34 = memref.load %arg1[%c3] : memref<16xf32, #tpu.memory_space<smem>>
    %35 = vector.broadcast %34 : f32 to vector<1x256xf32>
    %36 = arith.mulf %35, %33 : vector<1x256xf32>
    %37 = arith.addf %28, %36 : vector<1x256xf32>
    %c11 = arith.constant 11 : index
    %38 = memref.load %arg1[%c11] : memref<16xf32, #tpu.memory_space<smem>>
    %39 = vector.broadcast %38 : f32 to vector<1x256xf32>
    %40 = arith.mulf %39, %33 : vector<1x256xf32>
    %41 = arith.addf %32, %40 : vector<1x256xf32>
    %42 = vector.extract_strided_slice %5 {offsets = [4, 0], sizes = [1, 256], strides = [1, 1]} : vector<8x256xf32> to vector<1x256xf32>
    %c4 = arith.constant 4 : index
    %43 = memref.load %arg1[%c4] : memref<16xf32, #tpu.memory_space<smem>>
    %44 = vector.broadcast %43 : f32 to vector<1x256xf32>
    %45 = arith.mulf %44, %42 : vector<1x256xf32>
    %46 = arith.addf %37, %45 : vector<1x256xf32>
    %c12 = arith.constant 12 : index
    %47 = memref.load %arg1[%c12] : memref<16xf32, #tpu.memory_space<smem>>
    %48 = vector.broadcast %47 : f32 to vector<1x256xf32>
    %49 = arith.mulf %48, %42 : vector<1x256xf32>
    %50 = arith.addf %41, %49 : vector<1x256xf32>
    %51 = vector.extract_strided_slice %5 {offsets = [5, 0], sizes = [1, 256], strides = [1, 1]} : vector<8x256xf32> to vector<1x256xf32>
    %c5 = arith.constant 5 : index
    %52 = memref.load %arg1[%c5] : memref<16xf32, #tpu.memory_space<smem>>
    %53 = vector.broadcast %52 : f32 to vector<1x256xf32>
    %54 = arith.mulf %53, %51 : vector<1x256xf32>
    %55 = arith.addf %46, %54 : vector<1x256xf32>
    %c13 = arith.constant 13 : index
    %56 = memref.load %arg1[%c13] : memref<16xf32, #tpu.memory_space<smem>>
    %57 = vector.broadcast %56 : f32 to vector<1x256xf32>
    %58 = arith.mulf %57, %51 : vector<1x256xf32>
    %59 = arith.addf %50, %58 : vector<1x256xf32>
    %60 = vector.extract_strided_slice %5 {offsets = [6, 0], sizes = [1, 256], strides = [1, 1]} : vector<8x256xf32> to vector<1x256xf32>
    %c6 = arith.constant 6 : index
    %61 = memref.load %arg1[%c6] : memref<16xf32, #tpu.memory_space<smem>>
    %62 = vector.broadcast %61 : f32 to vector<1x256xf32>
    %63 = arith.mulf %62, %60 : vector<1x256xf32>
    %64 = arith.addf %55, %63 : vector<1x256xf32>
    %c14 = arith.constant 14 : index
    %65 = memref.load %arg1[%c14] : memref<16xf32, #tpu.memory_space<smem>>
    %66 = vector.broadcast %65 : f32 to vector<1x256xf32>
    %67 = arith.mulf %66, %60 : vector<1x256xf32>
    %68 = arith.addf %59, %67 : vector<1x256xf32>
    %69 = vector.extract_strided_slice %5 {offsets = [7, 0], sizes = [1, 256], strides = [1, 1]} : vector<8x256xf32> to vector<1x256xf32>
    %c7 = arith.constant 7 : index
    %70 = memref.load %arg1[%c7] : memref<16xf32, #tpu.memory_space<smem>>
    %71 = vector.broadcast %70 : f32 to vector<1x256xf32>
    %72 = arith.mulf %71, %69 : vector<1x256xf32>
    %73 = arith.addf %64, %72 : vector<1x256xf32>
    %c15 = arith.constant 15 : index
    %74 = memref.load %arg1[%c15] : memref<16xf32, #tpu.memory_space<smem>>
    %75 = vector.broadcast %74 : f32 to vector<1x256xf32>
    %76 = arith.mulf %75, %69 : vector<1x256xf32>
    %77 = arith.addf %68, %76 : vector<1x256xf32>
    %c0_5 = arith.constant 0 : index
    %c0_6 = arith.constant 0 : index
    %78 = vector.load %arg5[%c0_5, %c0_6] : memref<1x256xf32, #tpu.memory_space<vmem>>, vector<1x256xf32>
    tpu.vector_store %arg5[%c0_5, %c0_6], %77 {strides = array<i32>} : memref<1x256xf32, #tpu.memory_space<vmem>>, vector<1x256xf32>,
    %c0_7 = arith.constant 0 : index
    %c0_8 = arith.constant 0 : index
    %79 = vector.load %arg3[%c0_7, %c0_8] : memref<8x1xf32, #tpu.memory_space<vmem>>, vector<8x1xf32>
    %80 = vector.broadcast %79 : vector<8x1xf32> to vector<8x256xf32>
    %81 = vector.broadcast %77 : vector<1x256xf32> to vector<8x256xf32>
    %82 = arith.mulf %80, %81 : vector<8x256xf32>
    %83 = vector.broadcast %73 : vector<1x256xf32> to vector<8x256xf32>
    %84 = arith.subf %83, %82 : vector<8x256xf32>
    %c0_9 = arith.constant 0 : index
    %c0_10 = arith.constant 0 : index
    %85 = vector.load %arg6[%c0_9, %c0_10] : memref<8x256xf32, #tpu.memory_space<vmem>>, vector<8x256xf32>
    tpu.vector_store %arg6[%c0_9, %c0_10], %84 {strides = array<i32>} : memref<8x256xf32, #tpu.memory_space<vmem>>, vector<8x256xf32>,
    %86 = math.exp %84 : vector<8x256xf32>
    %c0_11 = arith.constant 0 : index
    %c0_12 = arith.constant 0 : index
    %87 = vector.load %arg4[%c0_11, %c0_12] : memref<8x256xf32, #tpu.memory_space<vmem>>, vector<8x256xf32>
    tpu.vector_store %arg4[%c0_11, %c0_12], %86 {strides = array<i32>} : memref<8x256xf32, #tpu.memory_space<vmem>>, vector<8x256xf32>,
    return
  }
  func.func @transform_0(%arg0: i32) -> i32 {
    %c0_i32 = arith.constant 0 : i32
    %c0_i32_0 = arith.constant 0 : i32
    return %c0_i32 : i32
  }
  func.func @transform_1(%arg0: i32) -> (i32, i32) {
    %c0_i32 = arith.constant 0 : i32
    %c0_i32_0 = arith.constant 0 : i32
    return %c0_i32, %arg0 : i32, i32
  }
  func.func @transform_2(%arg0: i32) -> (i32, i32) {
    %c0_i32 = arith.constant 0 : i32
    %c0_i32_0 = arith.constant 0 : i32
    %c0_i32_1 = arith.constant 0 : i32
    return %c0_i32, %c0_i32_0 : i32, i32
  }
  func.func @transform_3(%arg0: i32) -> (i32, i32) {
    %c0_i32 = arith.constant 0 : i32
    %c0_i32_0 = arith.constant 0 : i32
    return %c0_i32, %arg0 : i32, i32
  }
  func.func @transform_4(%arg0: i32) -> (i32, i32) {
    %c0_i32 = arith.constant 0 : i32
    %c0_i32_0 = arith.constant 0 : i32
    return %c0_i32, %arg0 : i32, i32
  }
  func.func @transform_5(%arg0: i32) -> (i32, i32) {
    %c0_i32 = arith.constant 0 : i32
    %c0_i32_0 = arith.constant 0 : i32
    return %c0_i32, %arg0 : i32, i32
  }
  func.func @transform_6(%arg0: i32) -> (i32, i32) {
    %c0_i32 = arith.constant 0 : i32
    %c0_i32_0 = arith.constant 0 : i32
    return %c0_i32, %arg0 : i32, i32
  }
}

</mosaic_0001>

<bundles_post_ra>
// kernel: tpu_custom_call.1
= control target key start
LH: loop header
LB: loop body
LE: loop exit
PB: predicated region body
PF: predicated region fallthrough
CT: control target
= control target key end

     0   :  { %s1452_s0 = inlined_call_operand.vmem [shape: f32[16], index: 0, kind: input, shape index: {}]   ;;  %s1453_s1 = inlined_call_operand.hbm [shape: f32[8,512], index: 1, kind: input, shape index: {}]   ;;  %s1454_s2 = inlined_call_operand.vmem [shape: f32[8,1], index: 2, kind: input, shape index: {}]   ;;  %s1455_s3 = inlined_call_operand.hbm [shape: f32[8,512], index: 3, kind: output, shape index: {0}]   ;;  %s1456_s4 = inlined_call_operand.hbm [shape: f32[1,512], index: 4, kind: output, shape index: {1}]   ;;  %s1457_s5 = inlined_call_operand.hbm [shape: f32[8,512], index: 5, kind: output, shape index: {2}]   ;;  %s1458_s6 = inlined_call_operand.hbm [shape: f32[8,512], index: 6, kind: output, shape index: {3}]  }
   0x1   :  { %1460 = sst [smem:[#allocation19_spill]] %s1452_s0 }
   0x2   :  { %1461 = sst [smem:[#allocation20_spill]] %s1453_s1 }
   0x3   :  { %1462 = sst [smem:[#allocation21_spill]] %s1454_s2 }
   0x4   :  { %12 = vsyncpa [#allocation5], 0 }
   0x5   :  { %13 = vsyncpa [#allocation3], 0 }
   0x6   :  { %15 = vsyncpa [#allocation3 + $0x1], 0 }
   0x7   :  { %16 = vsyncpa [#allocation4], 0 }
   0x8   :  { %18 = vsyncpa [#allocation4 + $0x1], 0 }
   0x9   :  { %19 = vsyncpa [#allocation9], 0 }
   0xa   :  { %21 = vsyncpa [#allocation9 + $0x1], 0 }
   0xb   :  { %22 = vsyncpa [#allocation12], 0 }
   0xc   :  { %24 = vsyncpa [#allocation12 + $0x1], 0  ;;  %s1166_s21 = smov 0   ;;  %s1168_s22 = smov 0  }
   0xd   :  { %s1170_s23 = smov 0   ;;  %s1172_s24 = smov 0  }
   0xe LB: > { %s1187_s25 = sadd.s32 4294967295, %s1127_s24   ;;  %s1459_s26 = sadd.s32 4294967294, %s1127_s24   ;;  %s1127_s24 = sphi %s1172_s24, %s1478_s24   ;;  %s1123_s23 = sphi %s1170_s23, %s1477_s23   ;;  %s1119_s22 = sphi %s1168_s22, %s1476_s22   ;;  %s1115_s21 = sphi %s1166_s21, %s1475_s21  }
   0xf   : > { %p71_p0 = scmp.ne.s32.totalorder %s1119_s22, %s1115_s21  ;;  %p72_p1 = scmp.eq.s32.totalorder %s1187_s25, 0 }
  0x10   : > { %p116_p2 = scmp.eq.s32.totalorder %s1187_s25, 1  ;;  %p122_p3 = scmp.eq.s32.totalorder %s1459_s26, 1 }
  0x11   : > { %p1198_p4 = por %p72_p1, %p71_p0  ;;  %p793_p5 = scmp.ge.s32.totalorder %s1127_s24, 1 }
  0x12   : > { %p1203_p6 = por %p122_p3, %p71_p0  ;;  %p207_p7 = scmp.lt.s32.totalorder %s1127_s24, 3 }
  0x13   : > { %s1465_s0 = sld [smem:[#allocation19_spill]]  ;;  %s1219_s9 = sadd.s32 1, %s1127_s24  }
  0x14   : > { %p1211_p8 = pnand %p793_p5, %p207_p7  ;;  %s55_s10 = ssub.s32 %s1127_s24, %s1219_s9 }
  0x15   : > { %p56_p12 = scmp.eq.s32.totalorder %s55_s10, 0  ;;  %s58_s11 = sadd.s32 1, %s1123_s23 }
  0x16   : > { %p852_p10 = pneg %p1211_p8  ;;  %p65_p13 = scmp.ne.s32.totalorder %s1123_s23, %s1119_s22 }
  0x17   : > { %s1129_s12 = smov [#allocation2]   ;;  %p66_p0 = scmp.eq.s32.totalorder %s1127_s24, 0 }
  0x18   : > { %p853_p11 = pnand %p852_p10, %p72_p1  ;;  %p1234_p3 = por %p116_p2, %p65_p13 }
  0x19   : > { %s219_s7 = sshll.u32 %s1465_s0, 4  ;;  %s233_s15 = sand.u32 1, %s1123_s23   ;;  %s220_s7 = int_to_ptr.vmem [resolvable:$true] %s219_s7 }
  0x1a   : > { %855 = dma.vmem_to_smem (!%p853_p11), %s220_s7, 16, %s1129_s12, [#allocation5]  }
  0x1b   : > { %s1229_s13 = scalar_select %p56_p12, %s1123_s23, %s58_s11  }
  0x1c   : > { %p67_p5 = por %p66_p0, %p65_p13  ;;  %p874_p7 = scmp.lt.s32.totalorder %s1127_s24, 2 }
  0x1d   : > { %1467 = sst [smem:[#allocation18_spill]] %s1229_s13  ;;  %s796_s16 = sshll.u32 %s233_s15, 4 }
  0x1e   : > { %s834_s17 = sshll.u32 %s1127_s24, 4  ;;  %s1469_s1 = sld [smem:[#allocation20_spill]] }
  0x1f   : > { %s237_s30 = scalar_lea.vmem [#allocation6], %s796_s16  ;;  %p1244_p10 = pnand %p874_p7, %p67_p5 }
  0x20   : > { %s246_s7 = sshll.u32 %s237_s30, 4  ;;  %s234_s11 = scalar_lea.sflag [#allocation3], %s233_s15  ;;  %s247_s7 = int_to_ptr.vmem [resolvable:$true] %s246_s7 }
  0x21   : > { %p939_p11 = pneg %p1244_p10 }
  0x24   : > { %s242_s20 = scalar_lea.hbm %s1469_s1, %s834_s17  ;;  %s942_s16 = scalar_lea.hbm %s1469_s1, 32 }
  0x25   : > { %s244_s29 = sshll.u32 %s242_s20, 4  ;;  %s245_s29 = int_to_ptr.hbm [resolvable:$true] %s244_s29 }
  0x26   : > { %s935_s12 = sshra.s32 %s245_s29, 4  ;;  %s936_s12 = int_to_ptr.hbm [resolvable:$true] %s935_s12 }
  0x27   : > { %s937_s26 = scalar_lea.hbm %s936_s12, 16  ;;  %p943_p0 = scmp.lt.s32.totalorder %s936_s12, %s1469_s1 }
  0x28   : > { %p938_p2 = scmp.ne.s32.totalorder %s936_s12, %s937_s26  ;;  %p944_p5 = scmp.lt.s32.totalorder %s942_s16, %s937_s26 }
  0x2a   : > { %p940_p12 = pnand %p939_p11, %p938_p2  ;;  %p945_p7 = por %p944_p5, %p943_p0 }
  0x2c   : > { %p941_p13 = pneg %p940_p12 }
  0x2e   : > { %p946_p9 = pnand %p945_p7, %p941_p13 }
  0x30   : > { %949 = shalt.err (!%p946_p9)
}
  0x31   : > { %859 = dma.hbm_to_vmem [thread:$0]  (!%p1244_p10), %s245_s29, 256, %s247_s7, %s234_s11  }
  0x32   : > { %255 = sbr.rel (%p1211_p8) target bundleno = 207 (0xcf), region = 32 }
  0x37   : > { %1094 = dma.done.wait (%p72_p1), [#allocation5], 16  }
  0x38   : > { %1096 = vsyncadd (%p72_p1), [#allocation5], 4294967280  ;;  %s1265_s15 = sand.u32 1, %s1119_s22  }
  0x39   : > { %s1268_s26 = sshll.u32 %s1265_s15, 4  ;;  %s263_s30 = scalar_lea.sflag [#allocation3], %s1265_s15 }
  0x3a   : > { %s266_s29 = scalar_lea.vmem [#allocation6], %s1268_s26 }
  0x3b   : > { %1098 = dma.done.wait (%p1198_p4), %s263_s30, 256  }
  0x3c   : > { %1100 = vsyncadd (%p1198_p4), %s263_s30, 4294967040 }
  0x3d   : > { %272 = sfence }
  0x3e   : > { %s1471_s2 = sld [smem:[#allocation21_spill]]  ;;  %v1130_v1 = vmov 0   ;;  %v317_v2 = vld [vmem:[%s266_s29] sm:$0xff]  ;;  %v318_v3 = vld [vmem:[%s266_s29 + $0x8] sm:$0xff]  ;;  %s1280_s10 = sshll.u32 %s1187_s25, 4 }
  0x3f   : > { %911 = vset.pattern.permute.xlu0 %v1130_v1  ;;  %vm319_vm0 = vcmp.le.f32.partialorder %v317_v2, 0.0  ;;  %vm320_vm1 = vcmp.le.f32.partialorder %v318_v3, 0.0  ;;  %s808_s27 = sld [smem:[#allocation2 + $0x9]]  ;;  %s609_s18 = scalar_lea.hbm %s1458_s6, %s1280_s10 }
  0x40   : > { %v321_v4 = vsel %vm319_vm0, 0.0001, %v317_v2  ;;  %v322_v5 = vsel %vm320_vm1, 0.0001, %v318_v3  ;;  %s806_s11 = sld [smem:[#allocation2 + $0x8]]  ;;  %s311_s20 = scalar_lea.vmem [#allocation11], %s1268_s26 }
  0x41   : > { %912 = vlog2.f32 %v321_v4  ;;  %s1286_s16 = sld [smem:[#allocation2 + $0x1]]  ;;  %s611_s30 = sshll.u32 %s311_s20, 4  ;;  %s612_s30 = int_to_ptr.vmem [resolvable:$true] %s611_s30 }
  0x42   : > { %914 = vlog2.f32 %v322_v5  ;;  %s1288_s19 = sld [smem:[#allocation2 + $0xa]]  ;;  %s1291_s29 = sshll.u32 %s609_s18, 4  ;;  %s614_s29 = int_to_ptr.hbm [resolvable:$true] %s1291_s29 }
  0x43   : > { %s1295_s8 = sld [smem:[#allocation2 + $0xb]]  ;;  %s979_s17 = sshra.s32 %s614_s29, 4  ;;  %s980_s17 = int_to_ptr.hbm [resolvable:$true] %s979_s17 }
  0x44   : > { %v516_v0 = vld [vmem:[%s1471_s2] sm:$0xff]  ;;  %s1300_s7 = sld [smem:[#allocation2]]  ;;  %s981_s18 = scalar_lea.hbm %s980_s17, 16 }
  0x45   : > { %519 = vperm.xlu0 %911, %v516_v0   ;;  %v350_v10 = vstv %s808_s27  ;;  %s1305_s12 = sld [smem:[#allocation2 + $0x2]]  ;;  %s554_s27 = scalar_lea.sflag [#allocation12], %s1265_s15 }
  0x46   : > { %v334_v12 = vstv %s806_s11  ;;  %p982_p1 = scmp.ne.s32.totalorder %s980_s17, %s981_s18  ;;  %s985_s1 = scalar_lea.hbm %s1458_s6, 32 }
  0x47   : > { %v913_v6 = vpop.eup %912  ;;  %p986_p9 = scmp.lt.s32.totalorder %s980_s17, %s1458_s6  ;;  %p987_p10 = scmp.lt.s32.totalorder %s985_s1, %s981_s18 }
  0x48   : > { %v915_v7 = vpop.eup %914  ;;  %v1293_v8 = vmul.f32 0.6931472, %v913_v6  ;;  %p983_p4 = pnand %p982_p1, %p1234_p3 }
  0x49   : > { %v1297_v9 = vmul.f32 0.6931472, %v915_v7  ;;  %p988_p2 = por %p987_p10, %p986_p9 }
  0x4a   : > { %v351_v11 = vmul.f32 %v350_v10, %v1293_v8  ;;  %327 = vst [vmem:[%s311_s20] sm:$0xff] %v1293_v8  ;;  %v335_v14 = vmul.f32 %v334_v12, %v1293_v8  ;;  %p984_p8 = pneg %p983_p4 }
  0x4b   : > { %v352_v13 = vmul.f32 %v350_v10, %v1297_v9  ;;  %328 = vst [vmem:[%s311_s20 + $0x8] sm:$0xff] %v1297_v9  ;;  %v336_v15 = vmul.f32 %v334_v12, %v1297_v9 }
  0x4c   : > { %p989_p11 = pnand %p988_p2, %p984_p8 }
  0x4e   : > { %992 = shalt.err (!%p989_p11)
}
  0x4f   : > { %847 = dma.vmem_to_hbm [thread:$0]  (%p1234_p3), %s612_s30, 256, %s614_s29, %s554_s27   ;;  %v355_v16 = vrot.slane %v351_v11, 1  ;;  %v356_v17 = vrot.slane %v352_v13, 1  ;;  %v374_v18 = vstv %s1288_s19  ;;  %v338_v19 = vstv %s1286_s16 }
  0x50   : > { %s1322_s0 = sld [smem:[#allocation2 + $0xc]]  ;;  %v375_v22 = vmul.f32 %v374_v18, %v1293_v8  ;;  %v376_v23 = vmul.f32 %v374_v18, %v1297_v9  ;;  %v339_v24 = vmul.f32 %v338_v19, %v1293_v8  ;;  %v398_v25 = vstv %s1295_s8  ;;  %s803_s30 = sshll.u32 %s1265_s15, 1 }
  0x51   : > { %v359_v20 = vadd.f32 %v355_v16, %v335_v14  ;;  %v360_v21 = vadd.f32 %v356_v17, %v336_v15  ;;  %s1327_s1 = sld [smem:[#allocation2 + $0xd]]  ;;  %v330_v26 = vstv %s1300_s7  ;;  %v340_v27 = vmul.f32 %v338_v19, %v1297_v9  ;;  %s827_s29 = sshll.u32 %s1187_s25, 1 }
  0x52   : > { %v379_v28 = vrot.slane %v375_v22, 2  ;;  %v380_v29 = vrot.slane %v376_v23, 2  ;;  %s1333_s2 = sld [smem:[#allocation2 + $0x3]]  ;;  %v362_v30 = vstv %s1305_s12  ;;  %v399_v31 = vmul.f32 %v398_v25, %v1293_v8  ;;  %s579_s27 = scalar_lea.hbm %s1456_s4, %s827_s29 }
  0x53   : > { %v400_v32 = vmul.f32 %v398_v25, %v1297_v9  ;;  %s1338_s13 = sld [smem:[#allocation2 + $0xe]]  ;;  %v331_v35 = vmul.f32 %v330_v26, %v1293_v8  ;;  %v332_v39 = vmul.f32 %v330_v26, %v1297_v9  ;;  %v343_v40 = vrot.slane %v339_v24, 1  ;;  %s543_s17 = sand.u32 1, %s1187_s25  }
  0x54   : > { %v383_v33 = vadd.f32 %v379_v28, %v359_v20  ;;  %v384_v34 = vadd.f32 %v380_v29, %v360_v21  ;;  %v403_v36 = vrot.slane %v399_v31, 3  ;;  %v344_v41 = vrot.slane %v340_v27, 1  ;;  %s1344_s16 = sld [smem:[#allocation2 + $0x4]]  ;;  %s297_s18 = scalar_lea.vmem [#allocation8], %s803_s30 }
  0x55   : > { %v404_v37 = vrot.slane %v400_v32, 3  ;;  %v363_v42 = vmul.f32 %v362_v30, %v1293_v8  ;;  %s1348_s19 = sld [smem:[#allocation2 + $0xf]]  ;;  %v364_v47 = vmul.f32 %v362_v30, %v1297_v9  ;;  %v347_v51 = vadd.f32 %v343_v40, %v331_v35  ;;  %s581_s11 = sshll.u32 %s297_s18, 4  ;;  %s582_s11 = int_to_ptr.vmem [resolvable:$true] %s581_s11 }
  0x56   : > { %v422_v38 = vstv %s1322_s0  ;;  %v407_v43 = vadd.f32 %v403_v36, %v383_v33  ;;  %v348_v55 = vadd.f32 %v344_v41, %v332_v39  ;;  %s1355_s20 = sld [smem:[#allocation2 + $0x5]]  ;;  %v511_v27 = vlaneseq  ;;  %s1382_s25 = scalar_lea.sflag [#allocation9], %s543_s17 }
  0x57   : > { %v408_v44 = vadd.f32 %v404_v37, %v384_v34  ;;  %v423_v45 = vmul.f32 %v422_v38, %v1293_v8  ;;  %v424_v46 = vmul.f32 %v422_v38, %v1297_v9  ;;  %v446_v48 = vstv %s1327_s1  ;;  %s1366_s8 = sld [smem:[#allocation2 + $0x6]]  ;;  %s583_s1 = sshll.u32 %s579_s27, 4  ;;  %s584_s1 = int_to_ptr.hbm [resolvable:$true] %s583_s1 }
  0x58   : > { %v386_v52 = vstv %s1333_s2  ;;  %v447_v53 = vmul.f32 %v446_v48, %v1293_v8  ;;  %v448_v54 = vmul.f32 %v446_v48, %v1297_v9  ;;  %v367_v56 = vrot.slane %v363_v42, 2  ;;  %s1377_s0 = sld [smem:[#allocation2 + $0x7]]  ;;  %s1007_s2 = sshra.s32 %s584_s1, 4  ;;  %s1008_s2 = int_to_ptr.hbm [resolvable:$true] %s1007_s2 }
  0x59   : > { %v427_v49 = vrot.slane %v423_v45, 4  ;;  %v428_v50 = vrot.slane %v424_v46, 4  ;;  %v368_v59 = vrot.slane %v364_v47, 2  ;;  %v470_v62 = vstv %s1338_s13  ;;  %s1009_s13 = scalar_lea.hbm %s1008_s2, 2  ;;  %p1014_p5 = scmp.lt.s32.totalorder %s1008_s2, %s1456_s4 }
  0x5a   : > { %v451_v60 = vrot.slane %v447_v53, 5  ;;  %v452_v61 = vrot.slane %v448_v54, 5  ;;  %v387_v63 = vmul.f32 %v386_v52, %v1293_v8  ;;  %v388_v0 = vmul.f32 %v386_v52, %v1297_v9  ;;  %p1010_p12 = scmp.ne.s32.totalorder %s1008_s2, %s1009_s13 }
  0x5b   : > { %v431_v57 = vadd.f32 %v427_v49, %v407_v43  ;;  %v432_v58 = vadd.f32 %v428_v50, %v408_v44  ;;  %v471_v2 = vmul.f32 %v470_v62, %v1293_v8  ;;  %v472_v3 = vmul.f32 %v470_v62, %v1297_v9 }
  0x5c   : > { %v410_v4 = vstv %s1344_s16  ;;  %v494_v6 = vstv %s1348_s19  ;;  %v371_v7 = vadd.f32 %v367_v56, %v347_v51  ;;  %v372_v10 = vadd.f32 %v368_v59, %v348_v55  ;;  %p1011_p13 = pnand %p1010_p12, %p1234_p3 }
  0x5d   : > { %v456_v1 = vadd.f32 %v452_v61, %v432_v58  ;;  %v455_v5 = vadd.f32 %v451_v60, %v431_v57  ;;  %v475_v11 = vrot.slane %v471_v2, 6  ;;  %v476_v12 = vrot.slane %v472_v3, 6 }
  0x5e   : > { %v391_v13 = vrot.slane %v387_v63, 3  ;;  %v392_v14 = vrot.slane %v388_v0, 3  ;;  %v495_v15 = vmul.f32 %v494_v6, %v1293_v8  ;;  %v496_v16 = vmul.f32 %v494_v6, %v1297_v9  ;;  %p1012_p0 = pneg %p1011_p13 }
  0x5f   : > { %v411_v17 = vmul.f32 %v410_v4, %v1293_v8  ;;  %v412_v18 = vmul.f32 %v410_v4, %v1297_v9  ;;  %v480_v19 = vadd.f32 %v476_v12, %v456_v1  ;;  %v434_v20 = vstv %s1355_s20  ;;  %s1013_s20 = scalar_lea.hbm %s1456_s4, 4 }
  0x60   : > { %v479_v21 = vadd.f32 %v475_v11, %v455_v5  ;;  %v499_v22 = vrot.slane %v495_v15, 7  ;;  %v500_v23 = vrot.slane %v496_v16, 7  ;;  %v395_v24 = vadd.f32 %v391_v13, %v371_v7  ;;  %p1015_p7 = scmp.lt.s32.totalorder %s1013_s20, %s1009_s13 }
  0x61   : > { %v396_v25 = vadd.f32 %v392_v14, %v372_v10  ;;  %v415_v28 = vrot.slane %v411_v17, 4  ;;  %v416_v29 = vrot.slane %v412_v18, 4  ;;  %v435_v30 = vmul.f32 %v434_v20, %v1293_v8 }
  0x62   : > { %v504_v26 = vadd.f32 %v500_v23, %v480_v19  ;;  %vm508_vm2 = vcmask 1040384   ;;  %v436_v31 = vmul.f32 %v434_v20, %v1297_v9  ;;  %v503_v32 = vadd.f32 %v499_v22, %v479_v21  ;;  %p1016_p1 = por %p1015_p7, %p1014_p5 }
  0x63   : > { %vm513_vm3 = vcmp.lt.s32.totalorder %v511_v27, 256  ;;  %v458_v34 = vstv %s1366_s8  ;;  %v419_v36 = vadd.f32 %v415_v28, %v395_v24  ;;  %v420_v37 = vadd.f32 %v416_v29, %v396_v25 }
  0x64   : > { %v507_v33 = vrot.slane %v504_v26, 7  ;;  %v439_v38 = vrot.slane %v435_v30, 5  ;;  %v440_v39 = vrot.slane %v436_v31, 5  ;;  %p1017_p4 = pnand %p1016_p1, %p1012_p0 }
  0x66   : > { %v509_v35 = vsel %vm508_vm2, %v503_v32, %v507_v33 }
  0x67   : > { %515 = vst.msk [vmem:[%s297_s18] sm:$0x3] %vm513_vm3, %v509_v35 }
  0x68   : > { %1020 = shalt.err (!%p1017_p4)
}
  0x69   : > { %845 = dma.vmem_to_hbm [thread:$0]  (%p1234_p3), %s582_s11, 32, %s584_s1, %s1382_s25   ;;  %v459_v40 = vmul.f32 %v458_v34, %v1293_v8  ;;  %v460_v41 = vmul.f32 %v458_v34, %v1297_v9  ;;  %v482_v42 = vstv %s1377_s0  ;;  %v443_v43 = vadd.f32 %v439_v38, %v419_v36 }
  0x6a   : > { %v444_v44 = vadd.f32 %v440_v39, %v420_v37  ;;  %v483_v47 = vmul.f32 %v482_v42, %v1293_v8  ;;  %v484_v48 = vmul.f32 %v482_v42, %v1297_v9  ;;  %v522_v55 = vperm.slane %v503_v32, 0  ;;  %s594_s12 = scalar_lea.hbm %s1457_s5, %s1280_s10  ;;  %s304_s27 = scalar_lea.vmem [#allocation10], %s1268_s26 }
  0x6b   : > { %v463_v45 = vrot.slane %v459_v40, 6  ;;  %v464_v46 = vrot.slane %v460_v41, 6  ;;  %v523_v56 = vperm.slane %v504_v26, 0  ;;  %s596_s17 = sshll.u32 %s304_s27, 4  ;;  %s598_s18 = sshll.u32 %s594_s12, 4  ;;  %s597_s17 = int_to_ptr.vmem [resolvable:$true] %s596_s17  ;;  %s599_s18 = int_to_ptr.hbm [resolvable:$true] %s598_s18 }
  0x6c   : > { %v487_v51 = vrot.slane %v483_v47, 7  ;;  %v488_v52 = vrot.slane %v484_v48, 7  ;;  %s565_s1 = scalar_lea.hbm %s1455_s3, %s1280_s10  ;;  %s1035_s2 = sshra.s32 %s599_s18, 4  ;;  %s1036_s2 = int_to_ptr.hbm [resolvable:$true] %s1035_s2 }
  0x6d   : > { %v467_v49 = vadd.f32 %v463_v45, %v443_v43  ;;  %v468_v50 = vadd.f32 %v464_v46, %v444_v44  ;;  %s1037_s13 = scalar_lea.hbm %s1036_s2, 16  ;;  %s1041_s20 = scalar_lea.hbm %s1457_s5, 32 }
  0x6e   : > { %p1038_p8 = scmp.ne.s32.totalorder %s1036_s2, %s1037_s13  ;;  %p1042_p2 = scmp.lt.s32.totalorder %s1036_s2, %s1457_s5 }
  0x6f   : > { %v491_v53 = vadd.f32 %v487_v51, %v467_v49  ;;  %v492_v54 = vadd.f32 %v488_v52, %v468_v50  ;;  %p1043_p11 = scmp.lt.s32.totalorder %s1041_s20, %s1037_s13 }
  0x70   : > { %p1039_p9 = pnand %p1038_p8, %p1234_p3 }
  0x71   : > { %v526_v57 = vperm.slane %v491_v53, 0  ;;  %v527_v58 = vperm.slane %v492_v54, 0  ;;  %p1044_p12 = por %p1043_p11, %p1042_p2 }
  0x72   : > { %p1040_p10 = pneg %p1039_p9 }
  0x74   : > { %p1045_p13 = pnand %p1044_p12, %p1040_p10 }
  0xb7   : > { %v520_v59 = vpop.permute.xlu0 %519 }
  0xb8   : > { %v524_v8 = vmul.f32 %v522_v55, %v520_v59  ;;  %v525_v60 = vmul.f32 %v523_v56, %v520_v59 }
  0xba   : > { %v528_v9 = vsub.f32 %v526_v57, %v524_v8  ;;  %v529_v61 = vsub.f32 %v527_v58, %v525_v60 }
  0xbc   : > { %530 = vst [vmem:[%s304_s27] sm:$0xff] %v528_v9  ;;  %v532_v62 = vmul.f32 1.442695, %v528_v9  ;;  %v534_v63 = vmul.f32 1.442695, %v529_v61 }
  0xbd   : > { %531 = vst [vmem:[%s304_s27 + $0x8] sm:$0xff] %v529_v61 }
  0xbe   : > { %916 = vpow2.f32 %v532_v62 }
  0xbf   : > { %1048 = shalt.err (!%p1045_p13)
}
  0xc0   : > { %846 = dma.vmem_to_hbm [thread:$0]  (%p1234_p3), %s597_s17, 256, %s599_s18, %s1382_s25   ;;  %918 = vpow2.f32 %v534_v63 }
  0xc1   : > { %s290_s10 = scalar_lea.vmem [#allocation7], %s1268_s26  ;;  %s569_s7 = sshll.u32 %s565_s1, 4  ;;  %s570_s7 = int_to_ptr.hbm [resolvable:$true] %s569_s7 }
  0xc2   : > { %s567_s8 = sshll.u32 %s290_s10, 4  ;;  %s539_s12 = scalar_lea.sflag [#allocation4], %s1265_s15  ;;  %s568_s8 = int_to_ptr.vmem [resolvable:$true] %s567_s8 }
  0xc3   : > { %s1063_s27 = sshra.s32 %s570_s7, 4  ;;  %s1069_s26 = scalar_lea.hbm %s1455_s3, 32  ;;  %s1064_s27 = int_to_ptr.hbm [resolvable:$true] %s1063_s27 }
  0xc4   : > { %v917_v0 = vpop.eup %916  ;;  %s1065_s11 = scalar_lea.hbm %s1064_s27, 16  ;;  %p1070_p1 = scmp.lt.s32.totalorder %s1064_s27, %s1455_s3 }
  0xc5   : > { %536 = vst [vmem:[%s290_s10] sm:$0xff] %v917_v0  ;;  %p1066_p0 = scmp.ne.s32.totalorder %s1064_s27, %s1065_s11  ;;  %p1071_p4 = scmp.lt.s32.totalorder %s1069_s26, %s1065_s11 }
  0xc6   : > { %v919_v1 = vpop.eup %918 }
  0xc7   : > { %537 = vst [vmem:[%s290_s10 + $0x8] sm:$0xff] %v919_v1  ;;  %p1067_p5 = pnand %p1066_p0, %p1234_p3  ;;  %p1072_p8 = por %p1071_p4, %p1070_p1 }
  0xc9   : > { %p1068_p7 = pneg %p1067_p5 }
  0xcb   : > { %p1073_p9 = pnand %p1072_p8, %p1068_p7 }
  0xcd   : > { %1076 = shalt.err (!%p1073_p9)
}
  0xce   : > { %844 = dma.vmem_to_hbm [thread:$0]  (%p1234_p3), %s568_s8, 256, %s570_s7, %s539_s12  }
  0xcf PF: > { %s625_s15 = sand.u32 1, %s1115_s21   ;;  %p1472_p10 = scmp.ge.s32.totalorder %s1127_s24, 2 }
  0xd0   : > { %s626_s1 = scalar_lea.sflag [#allocation4], %s625_s15 }
  0xd1   : > { %p861_p2 = pnand %p1472_p10, %p1203_p6 }
  0xd3   : > { %p862_p11 = pneg %p861_p2 }
  0xd5   : > { %1102 = dma.done.wait (%p862_p11), %s626_s1, 256  }
  0xd6   : > { %1104 = vsyncadd (%p862_p11), %s626_s1, 4294967040  ;;  %s1473_s2 = sadd.s32 4294967294, %s1127_s24  }
  0xd7   : > { %s635_s13 = sand.u32 1, %s1473_s2  }
  0xd8   : > { %s636_s16 = scalar_lea.sflag [#allocation9], %s635_s13 }
  0xd9   : > { %1106 = dma.done.wait (%p862_p11), %s636_s16, 288  }
  0xda   : > { %1108 = vsyncadd (%p862_p11), %s636_s16, 4294967008  ;;  %s656_s14 = scalar_lea.sflag [#allocation12], %s625_s15 }
  0xdb   : > { %1110 = dma.done.wait (%p862_p11), %s656_s14, 256  }
  0xdc   : > { %1112 = vsyncadd (%p862_p11), %s656_s14, 4294967040  ;;  %s1474_s19 = sld [smem:[#allocation18_spill]]  ;;  %p27_p3 = scmp.ge.s32.totalorder %s1219_s9, 4  }
  0xdd   : > { %s1475_s21 = smov %s1119_s22  ;;  %s1476_s22 = smov %s1123_s23 }
  0xde   : > { %s1478_s24 = smov %s1219_s9  ;;  %29 = sbr.rel (!%p27_p3) target bundleno = 14 (0xe), region = 131 }
  0xe2   : > { %s1477_s23 = smov %s1474_s19 }
  0xe3   :  { %662 = vsyncpa [#allocation3], 1 }
  0xe4   :  { %664 = vsyncpa [#allocation3 + $0x1], 1 }
  0xe5   :  { %665 = vsyncpa [#allocation4], 1 }
  0xe6   :  { %667 = vsyncpa [#allocation4 + $0x1], 1 }
  0xe7   :  { %668 = vsyncpa [#allocation9], 1 }
  0xe8   :  { %670 = vsyncpa [#allocation9 + $0x1], 1 }
  0xe9   :  { %671 = vsyncpa [#allocation12], 1 }
  0xea   :  { %673 = vsyncpa [#allocation12 + $0x1], 1 }
  0xeb   :  { %674 = vsyncpa [#allocation5], 1 }
  0xec   :  { %676 = vsyncpa [#allocation5 + $0x1], 1 }

</bundles_post_ra>
